<compile_context>
chip_gen: v7x
topology: tpu7x:2x2x1
jax: 0.10.0
libtpu: 0.0.40
codegen_flags: <defaults>
</compile_context>

<pallas_src>
import jax
import jax.numpy as jnp
from jax import lax
from jax.experimental import pallas as pl
from jax.experimental.pallas import tpu as pltpu

EPS_SCALE = 0.1    # deterministic "epsilon" hyperparameter (args.eps analogue)
_CHUNK = 512       # lanes per reduction chunk (multiple of 128)


def _rowwise_sumsq_f32(noise_ref):
    """Per-row sum of squares in f32 -> (TB, 1)."""
    tb, n_cols = noise_ref.shape
    if n_cols <= 2 * _CHUNK or n_cols % 128 != 0:
        # Small / layout-awkward rows: direct f32 reduce over the whole tile.
        nf = noise_ref[...].astype(jnp.float32)
        return jnp.sum(nf * nf, axis=-1, keepdims=True)

    n_full = n_cols // _CHUNK
    rem = n_cols - n_full * _CHUNK

    def body(c, acc):
        start = pl.multiple_of(c * _CHUNK, 128)
        chunk = noise_ref[:, pl.ds(start, _CHUNK)].astype(jnp.float32)
        return acc + chunk * chunk

    acc = lax.fori_loop(0, n_full, body,
                        jnp.zeros((tb, _CHUNK), jnp.float32),
                        unroll=bool(n_full <= 8))
    sumsq = jnp.sum(acc, axis=-1, keepdims=True)   # single cross-lane reduce
    if rem > 0:
        tail = noise_ref[:, n_full * _CHUNK:].astype(jnp.float32)
        sumsq = sumsq + jnp.sum(tail * tail, axis=-1, keepdims=True)
    return sumsq


def _trier_kernel(imgs_ref, noise_ref, out_ref):
    # Block is (TB, N): TB samples per grid step, each sample flattened to a
    # lane-dense row of N = C*H*W elements.
    sumsq = _rowwise_sumsq_f32(noise_ref)                 # (TB, 1) f32
    inv_norm = lax.rsqrt(sumsq + jnp.float32(1e-12))      # EUP rsqrt
    scale = jnp.float32(EPS_SCALE) * inv_norm             # keep scale in f32
    x = imgs_ref[...].astype(jnp.float32)
    n = noise_ref[...].astype(jnp.float32)
    out_ref[...] = (x + scale * n).astype(out_ref.dtype)  # cast only at store


def _round_down(x, m):
    return (x // m) * m


def _round_up(x, m):
    return -(-x // m) * m


def _pick_tile_rows(batch, n_cols, itemsize):
    """Choose tile rows (tb) and a matching vmem_limit_bytes."""
    sub = {4: 8, 2: 16, 1: 32}.get(itemsize, 8)    # dtype-aware sublane multiple
    row_bytes = n_cols * itemsize
    target_tile_bytes = 2 << 20                    # ~2 MiB input tiles
    vmem_live_budget = 20 << 20                    # safe across v5e/v6e/v7x
    # Worst-case live bytes per tile row: (2 in + 1 out) double-buffered plus
    # ~3 transient f32 row-temps inside the body.
    per_row_live = 6 * row_bytes + 12 * n_cols

    tb = max(sub, _round_down(target_tile_bytes // max(1, row_bytes), sub))
    fit = _round_down(vmem_live_budget // per_row_live, sub)
    if fit >= sub:
        tb = min(tb, fit)
    else:
        # TODO(synk): rows so wide that even `sub` rows blow the budget would
        # need N-dim tiling with a reduction grid axis; keep the minimal tile
        # and raise the VMEM limit instead.
        tb = sub

    # Megacore / pipelining: when the inputs are large enough to matter, force
    # >=4 grid steps (>=2 for small batches) so both v7x TensorCores run and
    # DMA for step i+1 overlaps compute/writeback of step i.
    total_in_bytes = batch * row_bytes
    if total_in_bytes >= (1 << 20):
        min_steps = 4 if batch >= 4 * sub else 2
        cap = _round_up(-(-batch // min_steps), sub)
        tb = min(tb, max(sub, cap))

    if tb >= batch:
        tb = batch                                 # full-extent block (legal)

    live_bytes = tb * per_row_live
    vmem_limit = int(min(48 << 20, max(32 << 20, live_bytes + (8 << 20))))
    return tb, vmem_limit


def trier_forward(imgs: jax.Array, noise: jax.Array) -> jax.Array:
    """imgs: (B, C, H, W), noise: (B, C, H, W) -> (B, C, H, W)."""
    assert imgs.shape == noise.shape, "imgs and noise must share the NCHW shape"
    B, C, H, W = imgs.shape
    N = C * H * W

    # Free, contiguous reshape in HBM to a lane-dense 2D layout.
    imgs2d = imgs.reshape(B, N)
    noise2d = noise.reshape(B, N)

    itemsize = jnp.dtype(imgs.dtype).itemsize
    tb, vmem_limit = _pick_tile_rows(B, N, itemsize)
    grid = (pl.cdiv(B, tb),)

    out2d = pl.pallas_call(
        _trier_kernel,
        out_shape=jax.ShapeDtypeStruct((B, N), imgs.dtype),
        grid=grid,
        in_specs=[
            pl.BlockSpec((tb, N), lambda b: (b, 0)),
            pl.BlockSpec((tb, N), lambda b: (b, 0)),
        ],
        out_specs=pl.BlockSpec((tb, N), lambda b: (b, 0)),
        compiler_params=pltpu.CompilerParams(
            dimension_semantics=("parallel",),
            vmem_limit_bytes=vmem_limit,
        ),
        # NOTE: add input_output_aliases={0: 0} if the caller can donate `imgs`
        # (saves one B*N HBM allocation; semantics unchanged).
    )(imgs2d, noise2d)

    return out2d.reshape(B, C, H, W)


def trier_reference(imgs: jax.Array, noise: jax.Array) -> jax.Array:
    x = imgs.astype(jnp.float32)
    n = noise.astype(jnp.float32)
    norm = jnp.sqrt(jnp.sum(n * n, axis=(1, 2, 3), keepdims=True) + 1e-12)
    return (x + EPS_SCALE * n / norm).astype(imgs.dtype)


if __name__ == "__main__":
    key = jax.random.PRNGKey(0)

    # 1) Small module-scale shape (single-step grid, direct f32 reduce).
    k1, k2, key = jax.random.split(key, 3)
    imgs = jax.random.uniform(k1, (2, 4, 16, 16), dtype=jnp.float32)
    noise = jax.random.normal(k2, (2, 4, 16, 16), dtype=jnp.float32)
    out = jax.block_until_ready(trier_forward(imgs, noise))
    ref = trier_reference(imgs, noise)
    assert out.shape == imgs.shape
    assert jnp.allclose(out, ref, atol=1e-5, rtol=1e-5), "f32 small mismatch"

    # 2) Larger f32 batch: multi-step grid (>=4 steps) + chunked reduction.
    k1, k2, key = jax.random.split(key, 3)
    imgs = jax.random.uniform(k1, (32, 3, 64, 64), dtype=jnp.float32)
    noise = jax.random.normal(k2, (32, 3, 64, 64), dtype=jnp.float32)
    out = jax.block_until_ready(trier_forward(imgs, noise))
    ref = trier_reference(imgs, noise)
    assert jnp.allclose(out, ref, atol=1e-5, rtol=1e-5), "f32 large mismatch"

    # 3) bf16 path: f32 FMA in-kernel, chunked (unrolled) reduction.
    k1, k2, key = jax.random.split(key, 3)
    imgs = jax.random.uniform(k1, (8, 4, 32, 32), dtype=jnp.bfloat16)
    noise = jax.random.normal(k2, (8, 4, 32, 32), dtype=jnp.bfloat16)
    out = jax.block_until_ready(trier_forward(imgs, noise))
    ref = trier_reference(imgs, noise)
    assert jnp.allclose(out.astype(jnp.float32), ref.astype(jnp.float32),
                        atol=2e-2, rtol=2e-2), "bf16 mismatch"

    print("KERNEL_OK")
</pallas_src>

<mosaic_0001>
module attributes {stable_mosaic.version = 11 : i64} {
  func.func @_trier_kernel(%arg0: i32, %arg1: memref<2x1024xf32, #tpu.memory_space<vmem>>, %arg2: memref<2x1024xf32, #tpu.memory_space<vmem>>, %arg3: memref<2x1024xf32, #tpu.memory_space<vmem>>) attributes {dimension_semantics = [#tpu.dimension_semantics<parallel>], iteration_bounds = array<i64: 1>, scalar_prefetch = 0 : i64, scratch_operands = 0 : i64, tpu.core_type = #tpu.core_type<tc>, window_params = [{transform_indices = @transform_0, window_bounds = array<i64: 2, 1024>}, {transform_indices = @transform_1, window_bounds = array<i64: 2, 1024>}, {transform_indices = @transform_2, window_bounds = array<i64: 2, 1024>}]} {
    %c0 = arith.constant 0 : index
    %c0_0 = arith.constant 0 : index
    %0 = vector.load %arg2[%c0, %c0_0] : memref<2x1024xf32, #tpu.memory_space<vmem>>, vector<2x1024xf32>
    %1 = arith.mulf %0, %0 : vector<2x1024xf32>
    %cst = arith.constant dense<0.000000e+00> : vector<2xf32>
    %2 = vector.multi_reduction <add>, %1, %cst [1] : vector<2x1024xf32> to vector<2xf32>
    %3 = vector.shape_cast %2 : vector<2xf32> to vector<2x1xf32>
    %cst_1 = arith.constant 9.99999996E-13 : f32
    %4 = vector.broadcast %cst_1 : f32 to vector<2x1xf32>
    %5 = arith.addf %3, %4 : vector<2x1xf32>
    %6 = math.rsqrt %5 : vector<2x1xf32>
    %cst_2 = arith.constant 1.000000e-01 : f32
    %7 = vector.broadcast %cst_2 : f32 to vector<2x1xf32>
    %8 = arith.mulf %7, %6 : vector<2x1xf32>
    %c0_3 = arith.constant 0 : index
    %c0_4 = arith.constant 0 : index
    %9 = vector.load %arg1[%c0_3, %c0_4] : memref<2x1024xf32, #tpu.memory_space<vmem>>, vector<2x1024xf32>
    %c0_5 = arith.constant 0 : index
    %c0_6 = arith.constant 0 : index
    %10 = vector.load %arg2[%c0_5, %c0_6] : memref<2x1024xf32, #tpu.memory_space<vmem>>, vector<2x1024xf32>
    %11 = vector.broadcast %8 : vector<2x1xf32> to vector<2x1024xf32>
    %12 = arith.mulf %11, %10 : vector<2x1024xf32>
    %13 = arith.addf %9, %12 : vector<2x1024xf32>
    %c0_7 = arith.constant 0 : index
    %c0_8 = arith.constant 0 : index
    %14 = vector.load %arg3[%c0_7, %c0_8] : memref<2x1024xf32, #tpu.memory_space<vmem>>, vector<2x1024xf32>
    tpu.vector_store %arg3[%c0_7, %c0_8], %13 {strides = array<i32>} : memref<2x1024xf32, #tpu.memory_space<vmem>>, vector<2x1024xf32>,
    return
  }
  func.func @transform_0(%arg0: i32) -> (i32, i32) {
    %c0_i32 = arith.constant 0 : i32
    %c0_i32_0 = arith.constant 0 : i32
    return %arg0, %c0_i32 : i32, i32
  }
  func.func @transform_1(%arg0: i32) -> (i32, i32) {
    %c0_i32 = arith.constant 0 : i32
    %c0_i32_0 = arith.constant 0 : i32
    return %arg0, %c0_i32 : i32, i32
  }
  func.func @transform_2(%arg0: i32) -> (i32, i32) {
    %c0_i32 = arith.constant 0 : i32
    %c0_i32_0 = arith.constant 0 : i32
    return %arg0, %c0_i32 : i32, i32
  }
}

</mosaic_0001>

<bundles_post_ra>
// kernel: tpu_custom_call.1
= control target key start
LH: loop header
LB: loop body
LE: loop exit
PB: predicated region body
PF: predicated region fallthrough
CT: control target
= control target key end

     0   :  { %7 = vsyncpa [#allocation3], 0  ;;  %s380_s0 = inlined_call_operand.hbm [shape: f32[2,1024], index: 0, kind: input, shape index: {}]   ;;  %s381_s1 = inlined_call_operand.hbm [shape: f32[2,1024], index: 1, kind: input, shape index: {}]   ;;  %s382_s2 = inlined_call_operand.hbm [shape: f32[2,1024], index: 2, kind: output, shape index: {}]  }
   0x1   :  { %8 = vsyncpa [#allocation6], 0 }
   0x2   :  { %9 = vsyncpa [#allocation4], 0  ;;  %s303_s9 = smov [#allocation2]   ;;  %s304_s11 = smov [#allocation5]  }
   0x3   :  { %s16_s10 = sshll.u32 %s303_s9, 4  ;;  %s26_s12 = sshll.u32 %s304_s11, 4  ;;  %s17_s10 = int_to_ptr.vmem [resolvable:$true] %s16_s10  ;;  %s27_s12 = int_to_ptr.vmem [resolvable:$true] %s26_s12 }
   0x4   :  { %s231_s15 = scalar_lea.hbm %s380_s0, 256 }
   0x5   :  { %p232_p0 = scmp.ne.s32.totalorder %s380_s0, %s231_s15  ;;  %p235_p1 = scmp.lt.u32.totalorder %s231_s15, %s380_s0 }
   0x7   :  { %p237_p2 = pnand %p235_p1, %p232_p0 }
   0x9   :  { %240 = shalt.err (!%p237_p2)
}
   0xa   :  { %s241_s20 = scalar_lea.vmem %s17_s10, 256  ;;  %p246_p4 = scmp.lt.s32.totalorder %s17_s10, %s17_s10 }
   0xb   :  { %p242_p3 = scmp.ne.s32.totalorder %s17_s10, %s241_s20  ;;  %p247_p5 = scmp.lt.s32.totalorder %s241_s20, %s241_s20 }
   0xd   :  { %p248_p6 = por %p247_p5, %p246_p4 }
   0xf   :  { %p249_p7 = pnand %p248_p6, %p242_p3 }
  0x11   :  { %252 = shalt.err (!%p249_p7)
}
  0x12   :  { %19 = dma.hbm_to_vmem [thread:$0]  %s380_s0, 256, %s17_s10, [#allocation3]  }
  0x13   :  { %s253_s25 = scalar_lea.hbm %s381_s1, 256 }
  0x14   :  { %p254_p8 = scmp.ne.s32.totalorder %s381_s1, %s253_s25  ;;  %p257_p9 = scmp.lt.u32.totalorder %s253_s25, %s381_s1 }
  0x16   :  { %p259_p10 = pnand %p257_p9, %p254_p8 }
  0x18   :  { %262 = shalt.err (!%p259_p10)
}
  0x19   :  { %s263_s30 = scalar_lea.vmem %s27_s12, 256  ;;  %p268_p12 = scmp.lt.s32.totalorder %s27_s12, %s27_s12 }
  0x1a   :  { %p264_p11 = scmp.ne.s32.totalorder %s27_s12, %s263_s30  ;;  %p269_p13 = scmp.lt.s32.totalorder %s263_s30, %s263_s30 }
  0x1c   :  { %p270_p0 = por %p269_p13, %p268_p12 }
  0x1e   :  { %p271_p1 = pnand %p270_p0, %p264_p11 }
  0x20   :  { %274 = shalt.err (!%p271_p1)
}
  0x21   :  { %29 = dma.hbm_to_vmem [thread:$0]  %s381_s1, 256, %s27_s12, [#allocation6]  }
  0x22   :  { %297 = dma.done.wait [#allocation3], 256  }
  0x23   :  { %298 = vsyncadd [#allocation3], 4294967040 }
  0x24   :  { %299 = dma.done.wait [#allocation6], 256  }
  0x25   :  { %300 = vsyncadd [#allocation6], 4294967040  ;;  %v46_v0 = vlaneseq  ;;  %v305_v1 = vmov 1983009808   ;;  %v36_v6 = vld [vmem:[#allocation5] sm:$0xff]  ;;  %v37_v7 = vld [vmem:[#allocation5 + $0x8] sm:$0xff] }
  0x26   :  { %v44_v2 = vunpack.c.l.s4 %v305_v1  ;;  %v38_v8 = vmul.f32 %v36_v6, %v36_v6  ;;  %v39_v9 = vmul.f32 %v37_v7, %v37_v7  ;;  %vm84_vm0 = vcmask 1041408   ;;  %v105_v63 = vld [vmem:[#allocation2] sm:$0xff]  ;;  %s306_s1 = smov [#allocation7]  }
  0x27   :  { %v47_v3 = vshrl.u32 %v46_v0, 7  ;;  %v109_v37 = vcombine.high %v36_v6, %v36_v6  ;;  %v126_v38 = vcombine.high %v37_v7, %v37_v7  ;;  %s213_s4 = sshll.u32 %s306_s1, 4  ;;  %s214_s4 = int_to_ptr.vmem [resolvable:$true] %s213_s4 }
  0x28   :  { %v45_v4 = vunpack.c.0.s8 %v44_v2  ;;  %v42_v10 = vcombine.high %v38_v8, %v38_v8  ;;  %v59_v14 = vcombine.high %v39_v9, %v39_v9  ;;  %v106_v2 = vld [vmem:[#allocation2 + $0x8] sm:$0xff]  ;;  %s275_s5 = scalar_lea.vmem %s214_s4, 256  ;;  %p280_p3 = scmp.lt.s32.totalorder %s214_s4, %s214_s4 }
  0x29   :  { %p276_p2 = scmp.ne.s32.totalorder %s214_s4, %s275_s5  ;;  %p281_p4 = scmp.lt.s32.totalorder %s275_s5, %s275_s5 }
  0x2a   :  { %v346_v5 = vsub.s32 %v45_v4, %v47_v3 }
  0x2b   :  { %p282_p5 = por %p281_p4, %p280_p3 }
  0x2c   :  { %v49_v11 = vrot.slane %v38_v8, %v346_v5  ;;  %v56_v12 = vrot.slane %v42_v10, %v346_v5  ;;  %v66_v15 = vrot.slane %v39_v9, %v346_v5  ;;  %v73_v21 = vrot.slane %v59_v14, %v346_v5 }
  0x2d   :  { %v116_v39 = vrot.slane %v36_v6, %v346_v5  ;;  %v123_v40 = vrot.slane %v109_v37, %v346_v5  ;;  %v133_v41 = vrot.slane %v37_v7, %v346_v5  ;;  %v140_v42 = vrot.slane %v126_v38, %v346_v5  ;;  %p283_p6 = pnand %p282_p5, %p276_p2 }
  0x2e   :  { %v57_v13 = vcombine.high %v49_v11, %v49_v11  ;;  %v85_v16 = vsel %vm84_vm0, %v49_v11, 0.0  ;;  %v58_v17 = vcombine.high %v56_v12, %v56_v12  ;;  %v88_v19 = vsel %vm84_vm0, %v56_v12, 0.0 }
  0x2f   :  { %v74_v22 = vcombine.high %v66_v15, %v66_v15  ;;  %v92_v25 = vsel %vm84_vm0, %v66_v15, 0.0  ;;  %v75_v27 = vcombine.high %v73_v21, %v73_v21  ;;  %v96_v30 = vsel %vm84_vm0, %v73_v21, 0.0 }
  0x30   :  { %v86_v18 = vsel %vm84_vm0, %v57_v13, 0.0  ;;  %v90_v23 = vsel %vm84_vm0, %v58_v17, 0.0  ;;  %v124_v43 = vcombine.high %v116_v39, %v116_v39  ;;  %v125_v44 = vcombine.high %v123_v40, %v123_v40 }
  0x31   :  { %v87_v20 = vadd.f32 %v86_v18, %v85_v16  ;;  %v94_v28 = vsel %vm84_vm0, %v74_v22, 0.0  ;;  %v98_v32 = vsel %vm84_vm0, %v75_v27, 0.0  ;;  %v141_v46 = vcombine.high %v133_v41, %v133_v41 }
  0x32   :  { %v142_v47 = vcombine.high %v140_v42, %v140_v42 }
  0x33   :  { %v89_v24 = vadd.f32 %v88_v19, %v87_v20 }
  0x35   :  { %v91_v26 = vadd.f32 %v90_v23, %v89_v24 }
  0x37   :  { %v93_v29 = vadd.f32 %v92_v25, %v91_v26 }
  0x39   :  { %v95_v31 = vadd.f32 %v94_v28, %v93_v29 }
  0x3b   :  { %v97_v33 = vadd.f32 %v96_v30, %v95_v31 }
  0x3d   :  { %v99_v34 = vadd.f32 %v98_v32, %v97_v33 }
  0x3f   :  { %100 = vadd.xlane.f32.xlu0 %v99_v34 }
  0xcc   :  { %v101_v35 = vpop.xlane.xlu0 %100 }
  0xcd   :  { %v102_v36 = vadd.f32 1e-12, %v101_v35 }
  0xcf   :  { %229 = vrsqrt.f32 %v102_v36 }
  0xd9   :  { %v230_v45 = vpop.eup %229 }
  0xda   :  { %v104_v48 = vmul.f32 0.1, %v230_v45 }
  0xdc   :  { %v151_v49 = vmul.f32 %v116_v39, %v104_v48  ;;  %v152_v50 = vmul.f32 %v124_v43, %v104_v48  ;;  %v153_v51 = vmul.f32 %v123_v40, %v104_v48  ;;  %v154_v52 = vmul.f32 %v125_v44, %v104_v48 }
  0xdd   :  { %v155_v53 = vmul.f32 %v133_v41, %v104_v48  ;;  %v156_v54 = vmul.f32 %v141_v46, %v104_v48  ;;  %v157_v55 = vmul.f32 %v140_v42, %v104_v48  ;;  %v158_v56 = vmul.f32 %v142_v47, %v104_v48 }
  0xde   :  { %v167_v57 = vcombine.low %v151_v49, %v152_v50  ;;  %v168_v58 = vcombine.low %v153_v51, %v154_v52 }
  0xdf   :  { %v184_v59 = vcombine.low %v155_v53, %v156_v54  ;;  %v185_v60 = vcombine.low %v157_v55, %v158_v56 }
  0xe0   :  { %v175_v61 = vrot.slane %v167_v57, %v346_v5  ;;  %v182_v62 = vrot.slane %v168_v58, %v346_v5 }
  0xe1   :  { %v192_v0 = vrot.slane %v184_v59, %v346_v5  ;;  %v199_v1 = vrot.slane %v185_v60, %v346_v5 }
  0xe2   :  { %v183_v3 = vcombine.low %v175_v61, %v182_v62 }
  0xe3   :  { %v200_v4 = vcombine.low %v192_v0, %v199_v1 }
  0xe4   :  { %v203_v6 = vadd.f32 %v183_v3, %v105_v63 }
  0xe5   :  { %v204_v7 = vadd.f32 %v200_v4, %v106_v2 }
  0xe6   :  { %205 = vst [vmem:[#allocation7] sm:$0xff] %v203_v6 }
  0xe7   :  { %206 = vst [vmem:[#allocation7 + $0x8] sm:$0xff] %v204_v7 }
  0xe8   :  { %286 = shalt.err (!%p283_p6)
}
  0xe9   :  { %s287_s8 = scalar_lea.hbm %s382_s2, 256 }
  0xea   :  { %p288_p7 = scmp.ne.s32.totalorder %s382_s2, %s287_s8  ;;  %p291_p8 = scmp.lt.u32.totalorder %s287_s8, %s382_s2 }
  0xec   :  { %p293_p9 = pnand %p291_p8, %p288_p7 }
  0xee   :  { %296 = shalt.err (!%p293_p9)
}
  0xef   :  { %216 = dma.vmem_to_hbm [thread:$0]  %s214_s4, 256, %s382_s2, [#allocation4]  }
  0xf0   :  { %301 = dma.done.wait [#allocation4], 256  }
  0xf1   :  { %302 = vsyncadd [#allocation4], 4294967040 }
  0xf2   :  { %220 = vsyncpa [#allocation3], 1 }
  0xf3   :  { %221 = vsyncpa [#allocation6], 1 }
  0xf4   :  { %222 = vsyncpa [#allocation4], 1 }

</bundles_post_ra>
